<compile_context>
chip_gen: v5e
topology: v5e:2x2
jax: 0.10.0
libtpu: 0.0.40
codegen_flags: <defaults>
</compile_context>

<pallas_src>
import jax
import jax.numpy as jnp
from jax import lax
from jax.experimental import pallas as pl
from jax.experimental.pallas import tpu as pltpu

NEG_INF = -1e30


def _round_up(x, m):
    return ((x + m - 1) // m) * m


def _pad_axis(x, axis, target):
    pad = target - x.shape[axis]
    if pad == 0:
        return x
    widths = [(0, 0)] * x.ndim
    widths[axis] = (0, pad)
    return jnp.pad(x, widths)


def _pick_batch_tile(batch, target):
    """Largest divisor of `batch` not exceeding `target` (avoids padded batches)."""
    bt = 1
    for cand in range(1, min(batch, target) + 1):
        if batch % cand == 0:
            bt = cand
    return bt


def _vmem_limit_bytes(bt, c_pad, q_pad, d_pad):
    """Scoped-VMEM limit from the actual per-step footprint (+ headroom)."""
    bf, f = 2, 4
    # Double-buffered pipelined blocks (bf16 c, q in; bf16 (c, 4d) out).
    blocks = 2 * bt * (c_pad * d_pad * bf + q_pad * d_pad * bf
                       + c_pad * 4 * d_pad * bf)
    # Live per-element intermediates (f32): s/S1/ec/S2 slabs + A/Bm/c_f + q temps.
    per_elem = (c_pad * q_pad) * f * 5 + (c_pad * d_pad) * f * 4 \
        + (q_pad * d_pad) * f * 3
    est = blocks + per_elem + (8 << 20)            # compiler scratch headroom
    lo, hi = 32 << 20, 96 << 20
    try:
        cap = int(pltpu.get_tpu_info().vmem_capacity_bytes)
        hi = min(hi, cap * 3 // 4)
    except Exception:
        pass
    return int(min(max(est, lo), max(hi, lo)))


def c2q_attention_kernel(c_lens_ref, q_lens_ref,          # scalar-prefetch (SMEM)
                         c_ref, q_ref, cw_ref, qw_ref, cqw_ref, bias_ref,
                         out_ref):
    f32 = jnp.float32
    bf16 = jnp.bfloat16

    bt, c_pad, d_pad = c_ref.shape
    q_pad = q_ref.shape[1]

    cw = cw_ref[...]          # (1, d_pad)  f32
    qw = qw_ref[...]          # (1, d_pad)  f32
    cqw = cqw_ref[...]        # (1, d_pad)  f32
    bias = bias_ref[0, 0]     # f32 scalar (SMEM)
    qw_b = qw.astype(bf16)

    b0 = pl.program_id(0) * bt
    row_ids = lax.broadcasted_iota(jnp.int32, (c_pad, 1), 0)
    col_ids = lax.broadcasted_iota(jnp.int32, (1, q_pad), 1)

    for t in range(bt):       # short static unroll over the batch tile
        c_b = c_ref[t]        # (c_pad, d_pad) bf16
        q_b = q_ref[t]        # (q_pad, d_pad) bf16
        c_len_t = c_lens_ref[b0 + t]
        q_len_t = q_lens_ref[b0 + t]

        c_f = c_b.astype(f32)
        q_f = q_b.astype(f32)

        # Fold s0 into the s2 matmul: sum_k c[i,k]*(q[j,k]*cqw[k] + cw[k])
        #                           = s2[i,j] + s0[i].
        q_s_b = (q_f * cqw + cw).astype(bf16)                       # (q_pad, d_pad)

        s = lax.dot_general(c_b, q_s_b, (((1,), (1,)), ((), ())),
                            preferred_element_type=f32)             # (c_pad, q_pad)
        s1 = lax.dot_general(qw_b, q_b, (((1,), (1,)), ((), ())),
                             preferred_element_type=f32)            # (1, q_pad)
        s = s + (s1 + bias)

        # --- masked softmax over the query axis (dim=2 in torch) -------------
        q_valid = col_ids < q_len_t                                  # (1, q_pad)
        sq = jnp.where(q_valid, s, NEG_INF)
        sq = sq - jnp.max(sq, axis=-1, keepdims=True)
        eq = jnp.exp(sq)
        S1 = eq * pl.reciprocal(jnp.sum(eq, axis=-1, keepdims=True), approx=True)
        S1_b = S1.astype(bf16)
        # Invariant: padded-q columns of S1 / S1_b are exactly zero here.

        # --- masked softmax over the context axis (dim=1 in torch) -----------
        # S1 in [0, 1] -> exp cannot overflow, so no max-subtraction; exp runs
        # on the bf16 copy (free EUP win on v6e/v7x), sums accumulate in f32.
        c_mask_col = (row_ids < c_len_t).astype(f32)                 # (c_pad, 1)
        ec = c_mask_col * jnp.exp(S1_b).astype(f32)
        S2 = ec * pl.reciprocal(jnp.sum(ec, axis=0, keepdims=True), approx=True)
        S2_b = S2.astype(bf16)

        # --- attention outputs ------------------------------------------------
        A = lax.dot_general(S1_b, q_b, (((1,), (0,)), ((), ())),
                            preferred_element_type=f32)             # (c_pad, d_pad)
        # Reassociated Q2C path: T = S2^T @ c, Bm = S1 @ T; the (c_len, c_len)
        # intermediate of the original formulation is never materialized.
        T = lax.dot_general(S2_b, c_b, (((0,), (0,)), ((), ())),
                            preferred_element_type=f32)             # (q_pad, d_pad)
        Bm = lax.dot_general(S1_b, T.astype(bf16), (((1,), (0,)), ((), ())),
                             preferred_element_type=f32)            # (c_pad, d_pad)

        odt = out_ref.dtype
        out_ref[t, :, 0 * d_pad:1 * d_pad] = c_b.astype(odt)
        out_ref[t, :, 1 * d_pad:2 * d_pad] = A.astype(odt)
        out_ref[t, :, 2 * d_pad:3 * d_pad] = (c_f * A).astype(odt)
        out_ref[t, :, 3 * d_pad:4 * d_pad] = (c_f * Bm).astype(odt)


def c2q_attention(c, q, c_mask, q_mask, c_weight, q_weight, cq_weight, bias,
                  *, out_dtype=jnp.bfloat16, batch_tile=4):
    B, c_len, d = c.shape
    _, q_len, _ = q.shape
    f32 = jnp.float32
    bf16 = jnp.bfloat16

    # Pad q_len / d to 128 lanes, c_len to 16 sublanes (bf16 packing); no-ops when
    # already aligned (e.g. d_model = 128 in QANet).  Padded query columns are
    # masked out in-kernel; padded context rows are masked out and zero.
    d_pad = _round_up(d, 128)
    q_pad = _round_up(q_len, 128)
    c_pad = _round_up(c_len, 16)
    bt = _pick_batch_tile(B, batch_tile)

    cp = _pad_axis(_pad_axis(c.astype(bf16), 2, d_pad), 1, c_pad)
    qp = _pad_axis(_pad_axis(q.astype(bf16), 2, d_pad), 1, q_pad)
    cw = _pad_axis(c_weight.reshape(1, d).astype(f32), 1, d_pad)
    qw = _pad_axis(q_weight.reshape(1, d).astype(f32), 1, d_pad)
    cqw = _pad_axis(cq_weight.reshape(1, d).astype(f32), 1, d_pad)
    b2 = bias.reshape(1, 1).astype(f32)

    # Per-batch valid lengths for in-kernel mask generation (assumes contiguous
    # prefix masks, the standard QANet convention).
    c_lens = jnp.sum(c_mask.reshape(B, c_len).astype(jnp.int32), axis=1)
    q_lens = jnp.sum(q_mask.reshape(B, q_len).astype(jnp.int32), axis=1)

    out = pl.pallas_call(
        c2q_attention_kernel,
        out_shape=jax.ShapeDtypeStruct((B, c_pad, 4 * d_pad), out_dtype),
        grid_spec=pltpu.PrefetchScalarGridSpec(
            num_scalar_prefetch=2,
            grid=(B // bt,),
            in_specs=[
                pl.BlockSpec((bt, c_pad, d_pad), lambda bi, cl, ql: (bi, 0, 0)),
                pl.BlockSpec((bt, q_pad, d_pad), lambda bi, cl, ql: (bi, 0, 0)),
                pl.BlockSpec((1, d_pad), lambda bi, cl, ql: (0, 0)),
                pl.BlockSpec((1, d_pad), lambda bi, cl, ql: (0, 0)),
                pl.BlockSpec((1, d_pad), lambda bi, cl, ql: (0, 0)),
                pl.BlockSpec(memory_space=pltpu.MemorySpace.SMEM),   # bias scalar
            ],
            out_specs=pl.BlockSpec((bt, c_pad, 4 * d_pad),
                                   lambda bi, cl, ql: (bi, 0, 0)),
        ),
        compiler_params=pltpu.CompilerParams(
            dimension_semantics=("parallel",),
            vmem_limit_bytes=_vmem_limit_bytes(bt, c_pad, q_pad, d_pad),
        ),
    )(c_lens, q_lens, cp, qp, cw, qw, cqw, b2)

    # Strip padding (no-ops when shapes are already aligned, e.g. d = 128).
    if d_pad != d:
        out = out.reshape(B, c_pad, 4, d_pad)[:, :, :, :d].reshape(B, c_pad, 4 * d)
    if c_pad != c_len:
        out = out[:, :c_len, :]
    return out


def c2q_attention_ref(c, q, c_mask, q_mask, c_weight, q_weight, cq_weight, bias):
    """Pure-JAX f32 reference mirroring the PyTorch module."""
    B, c_len, d = c.shape
    _, q_len, _ = q.shape
    cm = c_mask.astype(jnp.float32).reshape(B, c_len, 1)
    qm = q_mask.astype(jnp.float32).reshape(B, 1, q_len)
    s0 = jnp.matmul(c, c_weight)                                  # (B, c_len, 1)
    s1 = jnp.swapaxes(jnp.matmul(q, q_weight), 1, 2)              # (B, 1, q_len)
    s2 = jnp.matmul(c * cq_weight, jnp.swapaxes(q, 1, 2))         # (B, c_len, q_len)
    S = s0 + s1 + s2 + bias

    def masked_softmax(x, mask, axis):
        xm = mask * x + (1.0 - mask) * NEG_INF
        return jax.nn.softmax(xm, axis=axis)

    S1 = masked_softmax(S, qm, axis=2)
    S2 = masked_softmax(S1, cm, axis=1)
    A = jnp.matmul(S1, q)
    Bm = jnp.matmul(jnp.matmul(S1, jnp.swapaxes(S2, 1, 2)), c)
    return jnp.concatenate([c, A, c * A, c * Bm], axis=2)


if __name__ == "__main__":
    B, c_len, q_len, d = 2, 16, 8, 32

    key = jax.random.PRNGKey(0)
    kc, kq, kcw, kqw, kcqw = jax.random.split(key, 5)

    c = jax.random.normal(kc, (B, c_len, d), dtype=jnp.float32)
    q = jax.random.normal(kq, (B, q_len, d), dtype=jnp.float32)

    # Deterministic prefix masks: first tokens valid, tail masked out.
    c_valid = jnp.array([12, 16], dtype=jnp.int32)
    q_valid = jnp.array([6, 8], dtype=jnp.int32)
    c_mask = (jnp.arange(c_len)[None, :] < c_valid[:, None]).astype(jnp.float32)
    q_mask = (jnp.arange(q_len)[None, :] < q_valid[:, None]).astype(jnp.float32)

    # Xavier-uniform parameter init (same fan rules as torch.nn.init).
    bound_cw = (6.0 / (1 + d)) ** 0.5       # c_weight / q_weight: shape (d, 1)
    bound_cqw = (6.0 / (d + d)) ** 0.5      # cq_weight: shape (1, 1, d)
    c_weight = jax.random.uniform(kcw, (d, 1), jnp.float32, -bound_cw, bound_cw)
    q_weight = jax.random.uniform(kqw, (d, 1), jnp.float32, -bound_cw, bound_cw)
    cq_weight = jax.random.uniform(kcqw, (1, 1, d), jnp.float32, -bound_cqw, bound_cqw)
    bias = jnp.zeros((1,), dtype=jnp.float32)

    out = c2q_attention(c, q, c_mask, q_mask, c_weight, q_weight, cq_weight, bias)
    out = jax.block_until_ready(out)

    ref = c2q_attention_ref(c, q, c_mask, q_mask, c_weight, q_weight, cq_weight, bias)
    assert out.shape == (B, c_len, 4 * d), out.shape
    # bf16 inputs/outputs + bf16 MXU operands (f32 accumulation) + approx
    # reciprocal shift results at the ~1e-2 absolute level on these O(1)
    # activations; tolerance reflects that deliberate precision choice while
    # still catching any structural error.
    err = float(jnp.max(jnp.abs(out.astype(jnp.float32) - ref)))
    assert jnp.allclose(out.astype(jnp.float32), ref, atol=1e-1, rtol=5e-2), err

    print("KERNEL_OK")
</pallas_src>

<mosaic_0001>
module attributes {stable_mosaic.version = 11 : i64} {
  func.func @c2q_attention_kernel(%arg0: i32, %arg1: memref<2xi32, #tpu.memory_space<smem>>, %arg2: memref<2xi32, #tpu.memory_space<smem>>, %arg3: memref<2x16x128xbf16, #tpu.memory_space<vmem>>, %arg4: memref<2x128x128xbf16, #tpu.memory_space<vmem>>, %arg5: memref<1x128xf32, #tpu.memory_space<vmem>>, %arg6: memref<1x128xf32, #tpu.memory_space<vmem>>, %arg7: memref<1x128xf32, #tpu.memory_space<vmem>>, %arg8: memref<1x1xf32, #tpu.memory_space<smem>>, %arg9: memref<2x16x512xbf16, #tpu.memory_space<vmem>>) attributes {dimension_semantics = [#tpu.dimension_semantics<parallel>], iteration_bounds = array<i64: 1>, scalar_prefetch = 2 : i64, scratch_operands = 0 : i64, tpu.core_type = #tpu.core_type<tc>, window_params = [{transform_indices = @transform_0, window_bounds = array<i64: 2, 16, 128>}, {transform_indices = @transform_1, window_bounds = array<i64: 2, 128, 128>}, {pipeline_mode = #tpu.pipeline_mode<synchronous>, transform_indices = @transform_2, window_bounds = array<i64: 1, 128>}, {pipeline_mode = #tpu.pipeline_mode<synchronous>, transform_indices = @transform_3, window_bounds = array<i64: 1, 128>}, {pipeline_mode = #tpu.pipeline_mode<synchronous>, transform_indices = @transform_4, window_bounds = array<i64: 1, 128>}, {transform_indices = @transform_5, window_bounds = array<i64: 1, 1>}, {transform_indices = @transform_6, window_bounds = array<i64: 2, 16, 512>}]} {
    %c0 = arith.constant 0 : index
    %c0_0 = arith.constant 0 : index
    %0 = vector.load %arg5[%c0, %c0_0] : memref<1x128xf32, #tpu.memory_space<vmem>>, vector<1x128xf32>
    %c0_1 = arith.constant 0 : index
    %c0_2 = arith.constant 0 : index
    %1 = vector.load %arg6[%c0_1, %c0_2] : memref<1x128xf32, #tpu.memory_space<vmem>>, vector<1x128xf32>
    %c0_3 = arith.constant 0 : index
    %c0_4 = arith.constant 0 : index
    %2 = vector.load %arg7[%c0_3, %c0_4] : memref<1x128xf32, #tpu.memory_space<vmem>>, vector<1x128xf32>
    %c0_5 = arith.constant 0 : index
    %c0_6 = arith.constant 0 : index
    %3 = memref.load %arg8[%c0_5, %c0_6] : memref<1x1xf32, #tpu.memory_space<smem>>
    %4 = arith.truncf %1 : vector<1x128xf32> to vector<1x128xbf16>
    %c2_i32 = arith.constant 2 : i32
    %5 = arith.muli %arg0, %c2_i32 : i32
    %6 = tpu.iota {dimensions = array<i32: 0>} : vector<16x1xi32>
    %7 = tpu.iota {dimensions = array<i32: 1>} : vector<1x128xi32>
    %c0_7 = arith.constant 0 : index
    %c0_8 = arith.constant 0 : index
    %c0_9 = arith.constant 0 : index
    %8 = vector.load %arg3[%c0_7, %c0_8, %c0_9] : memref<2x16x128xbf16, #tpu.memory_space<vmem>>, vector<1x16x128xbf16>
    %9 = vector.shape_cast %8 : vector<1x16x128xbf16> to vector<16x128xbf16>
    %c0_10 = arith.constant 0 : index
    %c0_11 = arith.constant 0 : index
    %c0_12 = arith.constant 0 : index
    %10 = vector.load %arg4[%c0_10, %c0_11, %c0_12] : memref<2x128x128xbf16, #tpu.memory_space<vmem>>, vector<1x128x128xbf16>
    %11 = vector.shape_cast %10 : vector<1x128x128xbf16> to vector<128x128xbf16>
    %c0_i32 = arith.constant 0 : i32
    %12 = arith.addi %5, %c0_i32 : i32
    %13 = arith.index_cast %12 : i32 to index
    %14 = memref.load %arg1[%13] : memref<2xi32, #tpu.memory_space<smem>>
    %c0_i32_13 = arith.constant 0 : i32
    %15 = arith.addi %5, %c0_i32_13 : i32
    %16 = arith.index_cast %15 : i32 to index
    %17 = memref.load %arg2[%16] : memref<2xi32, #tpu.memory_space<smem>>
    %18 = arith.extf %9 : vector<16x128xbf16> to vector<16x128xf32>
    %19 = arith.extf %11 : vector<128x128xbf16> to vector<128x128xf32>
    %20 = vector.broadcast %2 : vector<1x128xf32> to vector<128x128xf32>
    %21 = arith.mulf %19, %20 : vector<128x128xf32>
    %22 = vector.broadcast %0 : vector<1x128xf32> to vector<128x128xf32>
    %23 = arith.addf %21, %22 : vector<128x128xf32>
    %24 = arith.truncf %23 : vector<128x128xf32> to vector<128x128xbf16>
    %cst = arith.constant dense<0.000000e+00> : vector<16x128xf32>
    %25 = tpu.matmul %9, %24, %cst {dimension_numbers = #tpu.dot_dimension_numbers<[1], [1], [0], [0], [0, 0, 1, 0], [], []>} : vector<16x128xbf16>, vector<128x128xbf16>, vector<16x128xf32> -> vector<16x128xf32>
    %cst_14 = arith.constant dense<0.000000e+00> : vector<1x128xf32>
    %26 = tpu.matmul %4, %11, %cst_14 {dimension_numbers = #tpu.dot_dimension_numbers<[1], [1], [0], [0], [0, 0, 1, 0], [], []>} : vector<1x128xbf16>, vector<128x128xbf16>, vector<1x128xf32> -> vector<1x128xf32>
    %27 = vector.broadcast %3 : f32 to vector<1x128xf32>
    %28 = arith.addf %26, %27 : vector<1x128xf32>
    %29 = vector.broadcast %28 : vector<1x128xf32> to vector<16x128xf32>
    %30 = arith.addf %25, %29 : vector<16x128xf32>
    %31 = vector.broadcast %17 : i32 to vector<1x128xi32>
    %32 = arith.cmpi slt, %7, %31 : vector<1x128xi32>
    %cst_15 = arith.constant -1.000000e+30 : f32
    %33 = vector.shape_cast %32 : vector<1x128xi1> to vector<1x128xi1>
    %34 = vector.broadcast %33 : vector<1x128xi1> to vector<16x128xi1>
    %35 = vector.broadcast %cst_15 : f32 to vector<16x128xf32>
    %36 = arith.select %34, %30, %35 : vector<16x128xi1>, vector<16x128xf32>
    %cst_16 = arith.constant dense<0xFF800000> : vector<16xf32>
    %37 = vector.multi_reduction <maximumf>, %36, %cst_16 [1] : vector<16x128xf32> to vector<16xf32>
    %38 = vector.shape_cast %37 : vector<16xf32> to vector<16x1xf32>
    %39 = vector.broadcast %38 : vector<16x1xf32> to vector<16x128xf32>
    %40 = arith.subf %36, %39 : vector<16x128xf32>
    %41 = math.exp %40 : vector<16x128xf32>
    %cst_17 = arith.constant dense<0.000000e+00> : vector<16xf32>
    %42 = vector.multi_reduction <add>, %41, %cst_17 [1] : vector<16x128xf32> to vector<16xf32>
    %43 = vector.shape_cast %42 : vector<16xf32> to vector<16x1xf32>
    %44 = tpu.reciprocal %43 {approx = true} : vector<16x1xf32> -> vector<16x1xf32>
    %45 = vector.broadcast %44 : vector<16x1xf32> to vector<16x128xf32>
    %46 = arith.mulf %41, %45 : vector<16x128xf32>
    %47 = arith.truncf %46 : vector<16x128xf32> to vector<16x128xbf16>
    %48 = vector.broadcast %14 : i32 to vector<16x1xi32>
    %49 = arith.cmpi slt, %6, %48 : vector<16x1xi32>
    %50 = arith.extui %49 : vector<16x1xi1> to vector<16x1xi32>
    %51 = arith.sitofp %50 : vector<16x1xi32> to vector<16x1xf32>
    %52 = math.exp %47 : vector<16x128xbf16>
    %53 = arith.extf %52 : vector<16x128xbf16> to vector<16x128xf32>
    %54 = vector.broadcast %51 : vector<16x1xf32> to vector<16x128xf32>
    %55 = arith.mulf %54, %53 : vector<16x128xf32>
    %cst_18 = arith.constant dense<0.000000e+00> : vector<128xf32>
    %56 = vector.multi_reduction <add>, %55, %cst_18 [0] : vector<16x128xf32> to vector<128xf32>
    %57 = vector.shape_cast %56 : vector<128xf32> to vector<1x128xf32>
    %58 = tpu.reciprocal %57 {approx = true} : vector<1x128xf32> -> vector<1x128xf32>
    %59 = vector.broadcast %58 : vector<1x128xf32> to vector<16x128xf32>
    %60 = arith.mulf %55, %59 : vector<16x128xf32>
    %61 = arith.truncf %60 : vector<16x128xf32> to vector<16x128xbf16>
    %cst_19 = arith.constant dense<0.000000e+00> : vector<16x128xf32>
    %62 = tpu.matmul %47, %11, %cst_19 {dimension_numbers = #tpu.dot_dimension_numbers<[1], [0], [0], [1], [0, 0, 1, 1], [], []>} : vector<16x128xbf16>, vector<128x128xbf16>, vector<16x128xf32> -> vector<16x128xf32>
    %cst_20 = arith.constant dense<0.000000e+00> : vector<128x128xf32>
    %63 = tpu.matmul %61, %9, %cst_20 {dimension_numbers = #tpu.dot_dimension_numbers<[0], [0], [1], [1], [0, 1, 1, 1], [], []>} : vector<16x128xbf16>, vector<16x128xbf16>, vector<128x128xf32> -> vector<128x128xf32>
    %64 = arith.truncf %63 : vector<128x128xf32> to vector<128x128xbf16>
    %cst_21 = arith.constant dense<0.000000e+00> : vector<16x128xf32>
    %65 = tpu.matmul %47, %64, %cst_21 {dimension_numbers = #tpu.dot_dimension_numbers<[1], [0], [0], [1], [0, 0, 1, 1], [], []>} : vector<16x128xbf16>, vector<128x128xbf16>, vector<16x128xf32> -> vector<16x128xf32>
    %c0_22 = arith.constant 0 : index
    %c0_23 = arith.constant 0 : index
    %c0_24 = arith.constant 0 : index
    %66 = vector.load %arg9[%c0_22, %c0_23, %c0_24] : memref<2x16x512xbf16, #tpu.memory_space<vmem>>, vector<1x16x128xbf16>
    %67 = vector.shape_cast %66 : vector<1x16x128xbf16> to vector<16x128xbf16>
    %68 = vector.shape_cast %9 : vector<16x128xbf16> to vector<1x16x128xbf16>
    tpu.vector_store %arg9[%c0_22, %c0_23, %c0_24], %68 {strides = array<i32>} : memref<2x16x512xbf16, #tpu.memory_space<vmem>>, vector<1x16x128xbf16>,
    %69 = arith.truncf %62 : vector<16x128xf32> to vector<16x128xbf16>
    %c0_25 = arith.constant 0 : index
    %c0_26 = arith.constant 0 : index
    %c128 = arith.constant 128 : index
    %70 = vector.load %arg9[%c0_25, %c0_26, %c128] : memref<2x16x512xbf16, #tpu.memory_space<vmem>>, vector<1x16x128xbf16>
    %71 = vector.shape_cast %70 : vector<1x16x128xbf16> to vector<16x128xbf16>
    %72 = vector.shape_cast %69 : vector<16x128xbf16> to vector<1x16x128xbf16>
    tpu.vector_store %arg9[%c0_25, %c0_26, %c128], %72 {strides = array<i32>} : memref<2x16x512xbf16, #tpu.memory_space<vmem>>, vector<1x16x128xbf16>,
    %73 = arith.mulf %18, %62 : vector<16x128xf32>
    %74 = arith.truncf %73 : vector<16x128xf32> to vector<16x128xbf16>
    %c0_27 = arith.constant 0 : index
    %c0_28 = arith.constant 0 : index
    %c256 = arith.constant 256 : index
    %75 = vector.load %arg9[%c0_27, %c0_28, %c256] : memref<2x16x512xbf16, #tpu.memory_space<vmem>>, vector<1x16x128xbf16>
    %76 = vector.shape_cast %75 : vector<1x16x128xbf16> to vector<16x128xbf16>
    %77 = vector.shape_cast %74 : vector<16x128xbf16> to vector<1x16x128xbf16>
    tpu.vector_store %arg9[%c0_27, %c0_28, %c256], %77 {strides = array<i32>} : memref<2x16x512xbf16, #tpu.memory_space<vmem>>, vector<1x16x128xbf16>,
    %78 = arith.mulf %18, %65 : vector<16x128xf32>
    %79 = arith.truncf %78 : vector<16x128xf32> to vector<16x128xbf16>
    %c0_29 = arith.constant 0 : index
    %c0_30 = arith.constant 0 : index
    %c384 = arith.constant 384 : index
    %80 = vector.load %arg9[%c0_29, %c0_30, %c384] : memref<2x16x512xbf16, #tpu.memory_space<vmem>>, vector<1x16x128xbf16>
    %81 = vector.shape_cast %80 : vector<1x16x128xbf16> to vector<16x128xbf16>
    %82 = vector.shape_cast %79 : vector<16x128xbf16> to vector<1x16x128xbf16>
    tpu.vector_store %arg9[%c0_29, %c0_30, %c384], %82 {strides = array<i32>} : memref<2x16x512xbf16, #tpu.memory_space<vmem>>, vector<1x16x128xbf16>,
    %c1 = arith.constant 1 : index
    %c0_31 = arith.constant 0 : index
    %c0_32 = arith.constant 0 : index
    %83 = vector.load %arg3[%c1, %c0_31, %c0_32] : memref<2x16x128xbf16, #tpu.memory_space<vmem>>, vector<1x16x128xbf16>
    %84 = vector.shape_cast %83 : vector<1x16x128xbf16> to vector<16x128xbf16>
    %c1_33 = arith.constant 1 : index
    %c0_34 = arith.constant 0 : index
    %c0_35 = arith.constant 0 : index
    %85 = vector.load %arg4[%c1_33, %c0_34, %c0_35] : memref<2x128x128xbf16, #tpu.memory_space<vmem>>, vector<1x128x128xbf16>
    %86 = vector.shape_cast %85 : vector<1x128x128xbf16> to vector<128x128xbf16>
    %c1_i32 = arith.constant 1 : i32
    %87 = arith.addi %5, %c1_i32 : i32
    %88 = arith.index_cast %87 : i32 to index
    %89 = memref.load %arg1[%88] : memref<2xi32, #tpu.memory_space<smem>>
    %c1_i32_36 = arith.constant 1 : i32
    %90 = arith.addi %5, %c1_i32_36 : i32
    %91 = arith.index_cast %90 : i32 to index
    %92 = memref.load %arg2[%91] : memref<2xi32, #tpu.memory_space<smem>>
    %93 = arith.extf %84 : vector<16x128xbf16> to vector<16x128xf32>
    %94 = arith.extf %86 : vector<128x128xbf16> to vector<128x128xf32>
    %95 = vector.broadcast %2 : vector<1x128xf32> to vector<128x128xf32>
    %96 = arith.mulf %94, %95 : vector<128x128xf32>
    %97 = vector.broadcast %0 : vector<1x128xf32> to vector<128x128xf32>
    %98 = arith.addf %96, %97 : vector<128x128xf32>
    %99 = arith.truncf %98 : vector<128x128xf32> to vector<128x128xbf16>
    %cst_37 = arith.constant dense<0.000000e+00> : vector<16x128xf32>
    %100 = tpu.matmul %84, %99, %cst_37 {dimension_numbers = #tpu.dot_dimension_numbers<[1], [1], [0], [0], [0, 0, 1, 0], [], []>} : vector<16x128xbf16>, vector<128x128xbf16>, vector<16x128xf32> -> vector<16x128xf32>
    %cst_38 = arith.constant dense<0.000000e+00> : vector<1x128xf32>
    %101 = tpu.matmul %4, %86, %cst_38 {dimension_numbers = #tpu.dot_dimension_numbers<[1], [1], [0], [0], [0, 0, 1, 0], [], []>} : vector<1x128xbf16>, vector<128x128xbf16>, vector<1x128xf32> -> vector<1x128xf32>
    %102 = vector.broadcast %3 : f32 to vector<1x128xf32>
    %103 = arith.addf %101, %102 : vector<1x128xf32>
    %104 = vector.broadcast %103 : vector<1x128xf32> to vector<16x128xf32>
    %105 = arith.addf %100, %104 : vector<16x128xf32>
    %106 = vector.broadcast %92 : i32 to vector<1x128xi32>
    %107 = arith.cmpi slt, %7, %106 : vector<1x128xi32>
    %cst_39 = arith.constant -1.000000e+30 : f32
    %108 = vector.shape_cast %107 : vector<1x128xi1> to vector<1x128xi1>
    %109 = vector.broadcast %108 : vector<1x128xi1> to vector<16x128xi1>
    %110 = vector.broadcast %cst_39 : f32 to vector<16x128xf32>
    %111 = arith.select %109, %105, %110 : vector<16x128xi1>, vector<16x128xf32>
    %cst_40 = arith.constant dense<0xFF800000> : vector<16xf32>
    %112 = vector.multi_reduction <maximumf>, %111, %cst_40 [1] : vector<16x128xf32> to vector<16xf32>
    %113 = vector.shape_cast %112 : vector<16xf32> to vector<16x1xf32>
    %114 = vector.broadcast %113 : vector<16x1xf32> to vector<16x128xf32>
    %115 = arith.subf %111, %114 : vector<16x128xf32>
    %116 = math.exp %115 : vector<16x128xf32>
    %cst_41 = arith.constant dense<0.000000e+00> : vector<16xf32>
    %117 = vector.multi_reduction <add>, %116, %cst_41 [1] : vector<16x128xf32> to vector<16xf32>
    %118 = vector.shape_cast %117 : vector<16xf32> to vector<16x1xf32>
    %119 = tpu.reciprocal %118 {approx = true} : vector<16x1xf32> -> vector<16x1xf32>
    %120 = vector.broadcast %119 : vector<16x1xf32> to vector<16x128xf32>
    %121 = arith.mulf %116, %120 : vector<16x128xf32>
    %122 = arith.truncf %121 : vector<16x128xf32> to vector<16x128xbf16>
    %123 = vector.broadcast %89 : i32 to vector<16x1xi32>
    %124 = arith.cmpi slt, %6, %123 : vector<16x1xi32>
    %125 = arith.extui %124 : vector<16x1xi1> to vector<16x1xi32>
    %126 = arith.sitofp %125 : vector<16x1xi32> to vector<16x1xf32>
    %127 = math.exp %122 : vector<16x128xbf16>
    %128 = arith.extf %127 : vector<16x128xbf16> to vector<16x128xf32>
    %129 = vector.broadcast %126 : vector<16x1xf32> to vector<16x128xf32>
    %130 = arith.mulf %129, %128 : vector<16x128xf32>
    %cst_42 = arith.constant dense<0.000000e+00> : vector<128xf32>
    %131 = vector.multi_reduction <add>, %130, %cst_42 [0] : vector<16x128xf32> to vector<128xf32>
    %132 = vector.shape_cast %131 : vector<128xf32> to vector<1x128xf32>
    %133 = tpu.reciprocal %132 {approx = true} : vector<1x128xf32> -> vector<1x128xf32>
    %134 = vector.broadcast %133 : vector<1x128xf32> to vector<16x128xf32>
    %135 = arith.mulf %130, %134 : vector<16x128xf32>
    %136 = arith.truncf %135 : vector<16x128xf32> to vector<16x128xbf16>
    %cst_43 = arith.constant dense<0.000000e+00> : vector<16x128xf32>
    %137 = tpu.matmul %122, %86, %cst_43 {dimension_numbers = #tpu.dot_dimension_numbers<[1], [0], [0], [1], [0, 0, 1, 1], [], []>} : vector<16x128xbf16>, vector<128x128xbf16>, vector<16x128xf32> -> vector<16x128xf32>
    %cst_44 = arith.constant dense<0.000000e+00> : vector<128x128xf32>
    %138 = tpu.matmul %136, %84, %cst_44 {dimension_numbers = #tpu.dot_dimension_numbers<[0], [0], [1], [1], [0, 1, 1, 1], [], []>} : vector<16x128xbf16>, vector<16x128xbf16>, vector<128x128xf32> -> vector<128x128xf32>
    %139 = arith.truncf %138 : vector<128x128xf32> to vector<128x128xbf16>
    %cst_45 = arith.constant dense<0.000000e+00> : vector<16x128xf32>
    %140 = tpu.matmul %122, %139, %cst_45 {dimension_numbers = #tpu.dot_dimension_numbers<[1], [0], [0], [1], [0, 0, 1, 1], [], []>} : vector<16x128xbf16>, vector<128x128xbf16>, vector<16x128xf32> -> vector<16x128xf32>
    %c1_46 = arith.constant 1 : index
    %c0_47 = arith.constant 0 : index
    %c0_48 = arith.constant 0 : index
    %141 = vector.load %arg9[%c1_46, %c0_47, %c0_48] : memref<2x16x512xbf16, #tpu.memory_space<vmem>>, vector<1x16x128xbf16>
    %142 = vector.shape_cast %141 : vector<1x16x128xbf16> to vector<16x128xbf16>
    %143 = vector.shape_cast %84 : vector<16x128xbf16> to vector<1x16x128xbf16>
    tpu.vector_store %arg9[%c1_46, %c0_47, %c0_48], %143 {strides = array<i32>} : memref<2x16x512xbf16, #tpu.memory_space<vmem>>, vector<1x16x128xbf16>,
    %144 = arith.truncf %137 : vector<16x128xf32> to vector<16x128xbf16>
    %c1_49 = arith.constant 1 : index
    %c0_50 = arith.constant 0 : index
    %c128_51 = arith.constant 128 : index
    %145 = vector.load %arg9[%c1_49, %c0_50, %c128_51] : memref<2x16x512xbf16, #tpu.memory_space<vmem>>, vector<1x16x128xbf16>
    %146 = vector.shape_cast %145 : vector<1x16x128xbf16> to vector<16x128xbf16>
    %147 = vector.shape_cast %144 : vector<16x128xbf16> to vector<1x16x128xbf16>
    tpu.vector_store %arg9[%c1_49, %c0_50, %c128_51], %147 {strides = array<i32>} : memref<2x16x512xbf16, #tpu.memory_space<vmem>>, vector<1x16x128xbf16>,
    %148 = arith.mulf %93, %137 : vector<16x128xf32>
    %149 = arith.truncf %148 : vector<16x128xf32> to vector<16x128xbf16>
    %c1_52 = arith.constant 1 : index
    %c0_53 = arith.constant 0 : index
    %c256_54 = arith.constant 256 : index
    %150 = vector.load %arg9[%c1_52, %c0_53, %c256_54] : memref<2x16x512xbf16, #tpu.memory_space<vmem>>, vector<1x16x128xbf16>
    %151 = vector.shape_cast %150 : vector<1x16x128xbf16> to vector<16x128xbf16>
    %152 = vector.shape_cast %149 : vector<16x128xbf16> to vector<1x16x128xbf16>
    tpu.vector_store %arg9[%c1_52, %c0_53, %c256_54], %152 {strides = array<i32>} : memref<2x16x512xbf16, #tpu.memory_space<vmem>>, vector<1x16x128xbf16>,
    %153 = arith.mulf %93, %140 : vector<16x128xf32>
    %154 = arith.truncf %153 : vector<16x128xf32> to vector<16x128xbf16>
    %c1_55 = arith.constant 1 : index
    %c0_56 = arith.constant 0 : index
    %c384_57 = arith.constant 384 : index
    %155 = vector.load %arg9[%c1_55, %c0_56, %c384_57] : memref<2x16x512xbf16, #tpu.memory_space<vmem>>, vector<1x16x128xbf16>
    %156 = vector.shape_cast %155 : vector<1x16x128xbf16> to vector<16x128xbf16>
    %157 = vector.shape_cast %154 : vector<16x128xbf16> to vector<1x16x128xbf16>
    tpu.vector_store %arg9[%c1_55, %c0_56, %c384_57], %157 {strides = array<i32>} : memref<2x16x512xbf16, #tpu.memory_space<vmem>>, vector<1x16x128xbf16>,
    return
  }
  func.func @transform_0(%arg0: i32, %arg1: memref<2xi32, #tpu.memory_space<smem>>, %arg2: memref<2xi32, #tpu.memory_space<smem>>) -> (i32, i32, i32) {
    %c0_i32 = arith.constant 0 : i32
    %c0_i32_0 = arith.constant 0 : i32
    %c0_i32_1 = arith.constant 0 : i32
    return %arg0, %c0_i32, %c0_i32_0 : i32, i32, i32
  }
  func.func @transform_1(%arg0: i32, %arg1: memref<2xi32, #tpu.memory_space<smem>>, %arg2: memref<2xi32, #tpu.memory_space<smem>>) -> (i32, i32, i32) {
    %c0_i32 = arith.constant 0 : i32
    %c0_i32_0 = arith.constant 0 : i32
    %c0_i32_1 = arith.constant 0 : i32
    return %arg0, %c0_i32, %c0_i32_0 : i32, i32, i32
  }
  func.func @transform_2(%arg0: i32, %arg1: memref<2xi32, #tpu.memory_space<smem>>, %arg2: memref<2xi32, #tpu.memory_space<smem>>) -> (i32, i32) {
    %c0_i32 = arith.constant 0 : i32
    %c0_i32_0 = arith.constant 0 : i32
    %c0_i32_1 = arith.constant 0 : i32
    return %c0_i32, %c0_i32_0 : i32, i32
  }
  func.func @transform_3(%arg0: i32, %arg1: memref<2xi32, #tpu.memory_space<smem>>, %arg2: memref<2xi32, #tpu.memory_space<smem>>) -> (i32, i32) {
    %c0_i32 = arith.constant 0 : i32
    %c0_i32_0 = arith.constant 0 : i32
    %c0_i32_1 = arith.constant 0 : i32
    return %c0_i32, %c0_i32_0 : i32, i32
  }
  func.func @transform_4(%arg0: i32, %arg1: memref<2xi32, #tpu.memory_space<smem>>, %arg2: memref<2xi32, #tpu.memory_space<smem>>) -> (i32, i32) {
    %c0_i32 = arith.constant 0 : i32
    %c0_i32_0 = arith.constant 0 : i32
    %c0_i32_1 = arith.constant 0 : i32
    return %c0_i32, %c0_i32_0 : i32, i32
  }
  func.func @transform_5(%arg0: i32, %arg1: memref<2xi32, #tpu.memory_space<smem>>, %arg2: memref<2xi32, #tpu.memory_space<smem>>) -> (i32, i32) {
    %c0_i32 = arith.constant 0 : i32
    %c0_i32_0 = arith.constant 0 : i32
    %c0_i32_1 = arith.constant 0 : i32
    return %c0_i32, %c0_i32_0 : i32, i32
  }
  func.func @transform_6(%arg0: i32, %arg1: memref<2xi32, #tpu.memory_space<smem>>, %arg2: memref<2xi32, #tpu.memory_space<smem>>) -> (i32, i32, i32) {
    %c0_i32 = arith.constant 0 : i32
    %c0_i32_0 = arith.constant 0 : i32
    %c0_i32_1 = arith.constant 0 : i32
    return %arg0, %c0_i32, %c0_i32_0 : i32, i32, i32
  }
}

</mosaic_0001>

<bundles_post_ra>
// kernel: tpu_custom_call.1
= control target key start
LH: loop header
LB: loop body
LE: loop exit
PB: predicated region body
PF: predicated region fallthrough
CT: control target
= control target key end

     0   :  { %s1103_s11 = smov [#allocation3]   ;;  %s1104_s12 = smov [#allocation4]   ;;  %s1350_s0 = inlined_call_operand.vmem [shape: s32[2], index: 0, kind: input, shape index: {}]   ;;  %s1351_s2 = inlined_call_operand.hbm [shape: bf16[2,16,128], index: 2, kind: input, shape index: {}]   ;;  %s1352_s3 = inlined_call_operand.hbm [shape: bf16[2,128,128], index: 3, kind: input, shape index: {}]   ;;  %s1353_s4 = inlined_call_operand.vmem [shape: f32[1,128], index: 4, kind: input, shape index: {}]   ;;  %s1354_s5 = inlined_call_operand.vmem [shape: f32[1,128], index: 5, kind: input, shape index: {}]   ;;  %s1355_s6 = inlined_call_operand.vmem [shape: f32[1,128], index: 6, kind: input, shape index: {}]   ;;  %s1356_s7 = inlined_call_operand.<no memory space> [shape: f32[1,1], index: 7, kind: input, shape index: {}]   ;;  %s1357_s8 = inlined_call_operand.hbm [shape: bf16[2,16,512], index: 8, kind: output, shape index: {}]   ;;  %s1358_s1 = inlined_call_operand.vmem [shape: s32[2], index: 1, kind: input, shape index: {}]  }
   0x1   :  { %s14_s29 = sshll.u32 %s1350_s0, 4  ;;  %s19_s10 = sshll.u32 %s1358_s1, 4  ;;  %s15_s29 = int_to_ptr.vmem [resolvable:$true] %s14_s29  ;;  %s20_s10 = int_to_ptr.vmem [resolvable:$true] %s19_s10 }
   0x2   :  { %17 = dma.vmem_to_smem %s15_s29, 16, %s1103_s11, [#allocation2] }
   0x3   :  { %22 = dma.vmem_to_smem %s20_s10, 16, %s1104_s12, [#allocation2] }
   0x4   :  { %1095 = dma.done.wait [#allocation2], 32 }
   0x5   :  { %1096 = vsyncadd [#allocation2], 4294967264 }
   0x6   :  { %26 = sfence }
   0x7   :  { %27 = vsyncpa [#allocation7], 0 }
   0x8   :  { %28 = vsyncpa [#allocation10], 0 }
   0x9   :  { %29 = vsyncpa [#allocation8], 0  ;;  %s34_s0 = sshll.u32 %s1351_s2, 4  ;;  %s1105_s15 = smov [#allocation6]   ;;  %s35_s0 = int_to_ptr.hbm [resolvable:$true] %s34_s0 }
   0xa   :  { %s36_s16 = sshll.u32 %s1105_s15, 4  ;;  %s47_s18 = sshll.u32 %s1352_s3, 4  ;;  %s37_s16 = int_to_ptr.vmem [resolvable:$true] %s36_s16  ;;  %s48_s18 = int_to_ptr.hbm [resolvable:$true] %s47_s18 }
   0xb   :  { %s1106_s19 = smov 64   ;;  %s1107_s20 = smov 4  }
   0xc   :  { %42 = dma.hbm_to_vmem [thread:$0]  %s35_s0, 256, %s37_s16, [#allocation7], %s1106_s19, %s1106_s19, %s1107_s20  }
   0xd   :  { %s1108_s21 = smov [#allocation9]  }
   0xe   :  { %s49_s22 = sshll.u32 %s1108_s21, 4  ;;  %s50_s22 = int_to_ptr.vmem [resolvable:$true] %s49_s22 }
   0xf   :  { %55 = dma.hbm_to_vmem [thread:$0]  %s48_s18, 2048, %s50_s22, [#allocation10], %s1106_s19, %s1106_s19, %s1107_s20  }
  0x10   :  { %1097 = dma.done.wait [#allocation7], 256  }
  0x11   :  { %1098 = vsyncadd [#allocation7], 4294967040 }
  0x12   :  { %1099 = dma.done.wait [#allocation10], 2048  }
  0x13   :  { %1100 = vsyncadd [#allocation10], 4294965248  ;;  %v1170_v0 = vld [vmem:[#allocation9 + $0x38] sm:$0xff]  ;;  %v1175_v2 = vld [vmem:[%s1355_s6] ss:$0 sm:$0xff]  ;;  %s103_s25 = sld [smem:[#allocation4]] }
  0x14   :  { %v100_v1 = vld [vmem:[#allocation9 + $0x38] sm:$0xff]   ;;  %217 = vmatpush.bf16.xpose.msra.mxu0 %v1170_v0  ;;  %v1181_v5 = vld [vmem:[%s1353_s4] ss:$0 sm:$0xff]  ;;  %v96_v16 = vld [vmem:[#allocation9 + $0x28] sm:$0xff]   ;;  %s102_s29 = sld [smem:[#allocation3]]  ;;  %vm343_vm3 = vcmask 130048  }
  0x15   :  { %v120_v3 = vunpack.c.l.bf16 %v100_v1  ;;  %v121_v4 = vunpack.c.h.bf16 %v100_v1  ;;  %v98_v6 = vld [vmem:[#allocation9 + $0x30] sm:$0xff]   ;;  %v116_v20 = vunpack.c.l.bf16 %v96_v16  ;;  %v117_v21 = vunpack.c.h.bf16 %v96_v16  ;;  %v1194_v23 = vld [vmem:[#allocation9 + $0x28] sm:$0xff]  ;;  %v94_v26 = vld [vmem:[#allocation9 + $0x20] sm:$0xff]   ;;  %s893_s30 = sld [smem:[#allocation4 + $0x1]]  ;;  %s1110_s11 = smov [#allocation11]  }
  0x16   :  { %v118_v7 = vunpack.c.l.bf16 %v98_v6  ;;  %v119_v8 = vunpack.c.h.bf16 %v98_v6  ;;  %v1187_v13 = vld [vmem:[#allocation9 + $0x30] sm:$0xff]  ;;  %v114_v29 = vunpack.c.l.bf16 %v94_v26  ;;  %v115_v30 = vunpack.c.h.bf16 %v94_v26  ;;  %v945_v32 = vld [vmem:[#allocation9 + $0x20] sm:$0xff]  ;;  %v92_v35 = vld [vmem:[#allocation9 + $0x18] sm:$0xff]   ;;  %s830_s12 = sshll.u32 %s1110_s11, 4  ;;  %s832_s0 = sshll.u32 %s1357_s8, 4  ;;  %s831_s12 = int_to_ptr.vmem [resolvable:$true] %s830_s12  ;;  %s833_s0 = int_to_ptr.hbm [resolvable:$true] %s832_s0 }
  0x17   :  { %v139_v9 = vmul.f32 %v1175_v2, %v120_v3  ;;  %v140_v10 = vmul.f32 %v1175_v2, %v121_v4  ;;  %v135_v24 = vmul.f32 %v1175_v2, %v116_v20  ;;  %v136_v25 = vmul.f32 %v1175_v2, %v117_v21  ;;  %v944_v41 = vld [vmem:[#allocation9 + $0x18] sm:$0xff]  ;;  %v90_v44 = vld [vmem:[#allocation9 + $0x10] sm:$0xff]   ;;  %v88_v54 = vld [vmem:[#allocation9 + $0x8] sm:$0xff]   ;;  %s1111_s15 = smov 256   ;;  %s1112_s16 = smov 16  }
  0x18   :  { %v137_v14 = vmul.f32 %v1175_v2, %v118_v7  ;;  %v138_v15 = vmul.f32 %v1175_v2, %v119_v8  ;;  %v133_v33 = vmul.f32 %v1175_v2, %v114_v29  ;;  %v134_v34 = vmul.f32 %v1175_v2, %v115_v30  ;;  %v940_v49 = vld [vmem:[#allocation6] sm:$0xff]  ;;  %v942_v60 = vld [vmem:[#allocation9 + $0x8] sm:$0xff]  ;;  %v86_v63 = vld [vmem:[#allocation9] sm:$0xff]  }
  0x19   :  { %v158_v11 = vadd.f32 %v1181_v5, %v139_v9  ;;  %v159_v12 = vadd.f32 %v1181_v5, %v140_v10  ;;  %v154_v27 = vadd.f32 %v1181_v5, %v135_v24  ;;  %v155_v28 = vadd.f32 %v1181_v5, %v136_v25  ;;  %375 = vmatpush.bf16.msra.mxu3 %v940_v49  ;;  %v943_v51 = vld [vmem:[#allocation9 + $0x10] sm:$0xff]  ;;  %v941_v8 = vld [vmem:[#allocation9] sm:$0xff] }
  0x1a   :  { %v156_v18 = vadd.f32 %v1181_v5, %v137_v14  ;;  %v157_v19 = vadd.f32 %v1181_v5, %v138_v15  ;;  %v152_v36 = vadd.f32 %v1181_v5, %v133_v33  ;;  %v153_v37 = vadd.f32 %v1181_v5, %v134_v34  ;;  %v74_v14 = vld [vmem:[%s1354_s5] sm:$0x1] }
  0x1b   :  { %v167_v17 = vpack.c.bf16 %v159_v12, %v158_v11  ;;  %v165_v31 = vpack.c.bf16 %v155_v28, %v154_v27  ;;  %v112_v38 = vunpack.c.l.bf16 %v92_v35  ;;  %v113_v39 = vunpack.c.h.bf16 %v92_v35 }
  0x1c   :  { %218 = vmatpush.bf16.xpose.msra.mxu0 %v1187_v13  ;;  %v166_v22 = vpack.c.bf16 %v157_v19, %v156_v18  ;;  %v164_v40 = vpack.c.bf16 %v153_v37, %v152_v36  ;;  %v110_v47 = vunpack.c.l.bf16 %v90_v44  ;;  %v111_v48 = vunpack.c.h.bf16 %v90_v44 }
  0x1d   :  { %237 = vmatpush.bf16.xpose.msra.mxu1 %v167_v17  ;;  %v131_v42 = vmul.f32 %v1175_v2, %v112_v38  ;;  %v132_v43 = vmul.f32 %v1175_v2, %v113_v39  ;;  %v108_v57 = vunpack.c.l.bf16 %v88_v54  ;;  %v109_v58 = vunpack.c.h.bf16 %v88_v54 }
  0x1e   :  { %v129_v52 = vmul.f32 %v1175_v2, %v110_v47  ;;  %v130_v53 = vmul.f32 %v1175_v2, %v111_v48  ;;  %v106_v4 = vunpack.c.l.bf16 %v86_v63  ;;  %v107_v6 = vunpack.c.h.bf16 %v86_v63 }
  0x1f   :  { %v150_v45 = vadd.f32 %v1181_v5, %v131_v42  ;;  %v151_v46 = vadd.f32 %v1181_v5, %v132_v43  ;;  %v127_v61 = vmul.f32 %v1175_v2, %v108_v57  ;;  %v128_v62 = vmul.f32 %v1175_v2, %v109_v58  ;;  %v1250_v58 = vld [vmem:[#allocation6] sm:$0xf] }
  0x20   :  { %v148_v55 = vadd.f32 %v1181_v5, %v129_v52  ;;  %v149_v56 = vadd.f32 %v1181_v5, %v130_v53  ;;  %v125_v9 = vmul.f32 %v1175_v2, %v106_v4  ;;  %v126_v10 = vmul.f32 %v1175_v2, %v107_v6  ;;  %439 = vst [vmem:[#allocation11] sm:$0xf] %v1250_v58 }
  0x21   :  { %v163_v50 = vpack.c.bf16 %v151_v46, %v150_v45  ;;  %v146_v1 = vadd.f32 %v1181_v5, %v127_v61  ;;  %v147_v3 = vadd.f32 %v1181_v5, %v128_v62  ;;  %v1225_v15 = vpack.c.bf16 %v74_v14, %v74_v14 }
  0x22   :  { %v162_v59 = vpack.c.bf16 %v149_v56, %v148_v55  ;;  %v144_v11 = vadd.f32 %v1181_v5, %v125_v9  ;;  %v145_v12 = vadd.f32 %v1181_v5, %v126_v10  ;;  %v79_v18 = vlaneseq }
  0x23   :  { %v161_v7 = vpack.c.bf16 %v147_v3, %v146_v1  ;;  %v251_v21 = vstv %s103_s25  ;;  %v277_v55 = vstv %s102_s29  ;;  %v1109_v61 = vmov 0.0  }
  0x24   :  { %219 = vmatpush.bf16.xpose.msra.mxu0 %v1194_v23  ;;  %v160_v16 = vpack.c.bf16 %v145_v12, %v144_v11  ;;  %v1237_v19 = vand.u32 127, %v79_v18  ;;  %v1242_v52 = vshrl.u32 %v79_v18, 7 }
  0x25   :  { %238 = vmatpush.bf16.xpose.msra.mxu1 %v166_v22 }
  0x26   :  { %vm252_vm0 = vcmp.lt.s32.totalorder %v1237_v19, %v251_v21  ;;  %v1246_v54 = vadd.s32 8, %v1242_v52  ;;  %vm278_vm1 = vcmp.lt.s32.totalorder %v1242_v52, %v277_v55 }
  0x27   :  { %v882_v62 = vsel %vm278_vm1, 1.0, %v1109_v61 }
  0x28   :  { %vm279_vm2 = vcmp.lt.s32.totalorder %v1246_v54, %v277_v55 }
  0x29   :  { %v883_v63 = vsel %vm279_vm2, 1.0, %v1109_v61 }
  0x2c   :  { %220 = vmatpush.bf16.xpose.msra.mxu0 %v945_v32 }
  0x2d   :  { %239 = vmatpush.bf16.xpose.msra.mxu1 %v165_v31 }
  0x34   :  { %221 = vmatpush.bf16.xpose.msra.mxu0 %v944_v41 }
  0x35   :  { %240 = vmatpush.bf16.xpose.msra.mxu1 %v164_v40 }
  0x3c   :  { %222 = vmatpush.bf16.xpose.msra.mxu0 %v943_v51 }
  0x3d   :  { %241 = vmatpush.bf16.xpose.msra.mxu1 %v163_v50 }
  0x44   :  { %223 = vmatpush.bf16.xpose.msra.mxu0 %v942_v60 }
  0x45   :  { %242 = vmatpush.bf16.xpose.msra.mxu1 %v162_v59 }
  0x4c   :  { %224 = vmatpush.bf16.xpose.msra.mxu0 %v941_v8 }
  0x4d   :  { %243 = vmatpush.bf16.xpose.msra.mxu1 %v161_v7 }
  0x53   :  { %225 = vmatmul.bf16.vlgmr.msra.gmra.mxu0 %v1225_v15 }
  0x54   :  { %313 = vmatpush.bf16.msrb.mxu0 %v1170_v0  ;;  %v168_v0 = vstv %s1356_s7  ;;  %s892_s7 = sld [smem:[#allocation3 + $0x1]] }
  0x55   :  { %244 = vmatpush.bf16.xpose.msra.mxu1 %v160_v16 }
  0x58   :  { %314 = vmatpush.bf16.msrb.mxu0 %v1187_v13 }
  0x5c   :  { %315 = vmatpush.bf16.msrb.mxu0 %v1194_v23  ;;  %245 = vmatmul.bf16.vlgmr.msra.gmra.mxu1 %v940_v49 }
  0x60   :  { %316 = vmatpush.bf16.msrb.mxu0 %v945_v32 }
  0x64   :  { %317 = vmatpush.bf16.msrb.mxu0 %v944_v41 }
  0x68   :  { %318 = vmatpush.bf16.msrb.mxu0 %v943_v51 }
  0x6c   :  { %319 = vmatpush.bf16.msrb.mxu0 %v942_v60 }
  0x70   :  { %320 = vmatpush.bf16.msrb.mxu0 %v941_v8 }
  0xd0   :  { %v226_v17 = vpop.f32.mrf.mxu0 }
  0xd1   :  { %v227_v13 = vadd.f32 %v226_v17, %v168_v0 }
  0xd3   :  { %v230_v20 = vperm.slane %v227_v13, 0  ;;  %v1255_v13 = vld [vmem:[#allocation6 + $0x4] sm:$0xf] }
  0xd4   :  { %440 = vst [vmem:[#allocation11 + $0x10] sm:$0xf] %v1255_v13 }
  0xd8   :  { %v228_v23 = vpop.f32.mrf.mxu0 }
  0xd9   :  { %v246_v22 = vpop.f32.mrf.mxu1 }
  0xda   :  { %v247_v24 = vadd.f32 %v246_v22, %v230_v20 }
  0xdc   :  { %v255_v25 = vsel %vm252_vm0, %v247_v24, -1e+30 }
  0xdd   :  { %257 = vmax.xlane.f32.xlu0 %v255_v25 }
  0xe1   :  { %v248_v26 = vpop.f32.mrf.mxu1 }
  0xe2   :  { %v249_v27 = vadd.f32 %v248_v26, %v230_v20  ;;  %v104_v20 = vunpack.c.l.bf16 %v1250_v58 }
  0xe4   :  { %v256_v28 = vsel %vm252_vm0, %v249_v27, -1e+30 }
  0xe5   :  { %259 = vmax.xlane.f32.xlu0 %v256_v28 }
 0x150   :  { %v258_v29 = vpop.xlane.xlu0 %257 }
 0x151   :  { %v261_v30 = vsub.f32 %v255_v25, %v258_v29  ;;  %v105_v25 = vunpack.c.l.bf16 %v1255_v13 }
 0x153   :  { %v263_v31 = vmul.f32 1.442695, %v261_v30 }
 0x155   :  { %971 = vpow2.f32 %v263_v31 }
 0x158   :  { %v260_v32 = vpop.xlane.xlu0 %259 }
 0x159   :  { %v262_v33 = vsub.f32 %v256_v28, %v260_v32 }
 0x15b   :  { %v972_v34 = vpop.eup %971  ;;  %v265_v35 = vmul.f32 1.442695, %v262_v33 }
 0x15c   :  { %267 = vadd.xlane.f32.xlu1 %v972_v34 }
 0x15d   :  { %973 = vpow2.f32 %v265_v35 }
 0x163   :  { %v974_v36 = vpop.eup %973 }
 0x164   :  { %269 = vadd.xlane.f32.xlu1 %v974_v36 }
 0x1cf   :  { %v268_v37 = vpop.xlane.xlu1 %267 }
 0x1d0   :  { %975 = vrcp.f32 %v268_v37 }
 0x1d6   :  { %v976_v38 = vpop.eup %975 }
 0x1d7   :  { %v273_v39 = vmul.f32 %v976_v38, %v972_v34  ;;  %v270_v40 = vpop.xlane.xlu1 %269 }
 0x1d8   :  { %977 = vrcp.f32 %v270_v40 }
 0x1d9   :  { %v275_v41 = vpack.c.bf16 %v273_v39, %v273_v39 }
 0x1db   :  { %v284_v42 = vunpack.c.l.bf16 %v275_v41  ;;  %v309_v47 = vunpack.c.l.b16 %v275_v41 }
 0x1dd   :  { %v286_v43 = vmul.f32 1.442695, %v284_v42 }
 0x1de   :  { %v978_v44 = vpop.eup %977 }
 0x1df   :  { %v274_v45 = vmul.f32 %v978_v44, %v974_v36  ;;  %979 = vpow2.f32 %v286_v43 }
 0x1e1   :  { %v276_v46 = vpack.c.bf16 %v274_v45, %v274_v45 }
 0x1e3   :  { %v310_v48 = vunpack.c.l.b16 %v276_v46  ;;  %v285_v49 = vunpack.c.l.bf16 %v276_v46 }
 0x1e5   :  { %v1240_v50 = vpack.c.b16 %v310_v48, %v309_v47  ;;  %v288_v51 = vmul.f32 1.442695, %v285_v49  ;;  %v980_v53 = vpop.eup %979 }
 0x1e6   :  { %v290_v56 = vpack.c.bf16 %v980_v53, %v980_v53 }
 0x1e7   :  { %321 = vmatmul.bf16.vlgmr.msrb.gmra.mxu0 %v1240_v50  ;;  %981 = vpow2.f32 %v288_v51 }
 0x1e8   :  { %v292_v60 = vunpack.c.l.bf16 %v290_v56 }
 0x1ea   :  { %v294_v3 = vmul.f32 %v882_v62, %v292_v60  ;;  %v957_v62 = vld [vmem:[#allocation9 + $0x78] sm:$0xff] }
 0x1eb   :  { %586 = vmatpush.bf16.xpose.msra.mxu0 %v957_v62  ;;  %682 = vmatpush.bf16.msra.mxu2 %v957_v62 }
 0x1ed   :  { %v982_v57 = vpop.eup %981 }
 0x1ee   :  { %v291_v59 = vpack.c.bf16 %v982_v57, %v982_v57 }
 0x1f0   :  { %v293_v1 = vunpack.c.l.bf16 %v291_v59 }
 0x1f2   :  { %v295_v4 = vmul.f32 %v883_v63, %v293_v1 }
 0x1f4   :  { %v296_v6 = vadd.f32 %v295_v4, %v294_v3 }
 0x1f6   :  { %v297_v7 = vrot.slane %v296_v6, 4 }
 0x1f8   :  { %v298_v8 = vadd.f32 %v297_v7, %v296_v6  ;;  %v955_v6 = vld [vmem:[#allocation9 + $0x68] sm:$0xff] }
 0x1fa   :  { %v299_v9 = vrot.slane %v298_v8, 2 }
 0x1fc   :  { %v300_v10 = vadd.f32 %v299_v9, %v298_v8  ;;  %v475_v9 = vld [vmem:[#allocation9 + $0x78] sm:$0xff]  }
 0x1fe   :  { %v301_v11 = vrot.slane %v300_v10, 1 }
 0x200   :  { %v302_v12 = vadd.f32 %v301_v11, %v300_v10  ;;  %v496_v10 = vunpack.c.l.bf16 %v475_v9  ;;  %v497_v11 = vunpack.c.h.bf16 %v475_v9 }
 0x202   :  { %983 = vrcp.f32 %v302_v12  ;;  %v954_v12 = vld [vmem:[#allocation9 + $0x60] sm:$0xff] }
 0x208   :  { %v984_v14 = vpop.eup %983 }
 0x209   :  { %v304_v16 = vmul.f32 %v984_v14, %v294_v3  ;;  %v305_v17 = vmul.f32 %v984_v14, %v295_v4  ;;  %v956_v3 = vld [vmem:[#allocation9 + $0x70] sm:$0xff]  ;;  %v512_v14 = vmul.f32 %v1175_v2, %v496_v10 }
 0x20a   :  { %587 = vmatpush.bf16.xpose.msra.mxu0 %v956_v3  ;;  %683 = vmatpush.bf16.msra.mxu2 %v956_v3  ;;  %v949_v3 = vld [vmem:[#allocation6 + $0x8] sm:$0xff] }
 0x20b   :  { %v306_v18 = vpack.c.bf16 %v305_v17, %v304_v16  ;;  %v513_v16 = vmul.f32 %v1175_v2, %v497_v11  ;;  %v473_v17 = vld [vmem:[#allocation9 + $0x70] sm:$0xff]  }
 0x20d   :  { %327 = vxpose.xlu2.c.b16.start.end [1/1] (short) %v306_v18, 128  ;;  %v528_v18 = vadd.f32 %v1181_v5, %v512_v14 }
 0x20e   :  { %684 = vmatpush.bf16.msra.mxu2 %v955_v6 }
 0x212   :  { %588 = vmatpush.bf16.xpose.msra.mxu0 %v955_v6  ;;  %685 = vmatpush.bf16.msra.mxu2 %v954_v12 }
 0x21a   :  { %589 = vmatpush.bf16.xpose.msra.mxu0 %v954_v12 }
 0x264   :  { %v322_v21 = vpop.f32.mrf.mxu0 }
 0x265   :  { %v441_v22 = vpack.c.bf16 %v322_v21, %v322_v21  ;;  %v445_v23 = vmul.f32 %v322_v21, %v104_v20  ;;  %v529_v21 = vadd.f32 %v1181_v5, %v513_v16 }
 0x267   :  { %443 = vst [vmem:[#allocation11 + $0x4] sm:$0xf] %v441_v22  ;;  %v447_v24 = vpack.c.bf16 %v445_v23, %v445_v23  ;;  %v494_v22 = vunpack.c.l.bf16 %v473_v17  ;;  %v495_v23 = vunpack.c.h.bf16 %v473_v17 }
 0x269   :  { %449 = vst [vmem:[#allocation11 + $0x8] sm:$0xf] %v447_v24  ;;  %v953_v24 = vld [vmem:[#allocation9 + $0x58] sm:$0xff] }
 0x26a   :  { %686 = vmatpush.bf16.msra.mxu2 %v953_v24  ;;  %590 = vmatpush.bf16.xpose.msra.mxu0 %v953_v24 }
 0x26c   :  { %v324_v26 = vpop.f32.mrf.mxu0 }
 0x26d   :  { %v442_v27 = vpack.c.bf16 %v324_v26, %v324_v26  ;;  %v446_v28 = vmul.f32 %v324_v26, %v105_v25  ;;  %v537_v26 = vpack.c.bf16 %v529_v21, %v528_v18  ;;  %v461_v18 = vld [vmem:[#allocation9 + $0x40] sm:$0xff]  }
 0x26f   :  { %444 = vst [vmem:[#allocation11 + $0x14] sm:$0xf] %v442_v27  ;;  %v448_v29 = vpack.c.bf16 %v446_v28, %v446_v28  ;;  %v510_v27 = vmul.f32 %v1175_v2, %v494_v22  ;;  %v511_v28 = vmul.f32 %v1175_v2, %v495_v23  ;;  %v482_v22 = vunpack.c.l.bf16 %v461_v18 }
 0x270   :  { %v483_v23 = vunpack.c.h.bf16 %v461_v18 }
 0x271   :  { %450 = vst [vmem:[#allocation11 + $0x18] sm:$0xf] %v448_v29  ;;  %v471_v29 = vld [vmem:[#allocation9 + $0x68] sm:$0xff]  }
 0x2ae   :  { %v335_v30 = vpop.trf.xlu2 }
 0x2af   :  { %884 = vmatmul.msk.bf16.vlgmr.msra.gmra.mxu3 %vm343_vm3, %v335_v30  ;;  %v526_v30 = vadd.f32 %v1181_v5, %v510_v27  ;;  %v499_v27 = vmul.f32 %v1175_v2, %v483_v23 }
 0x2be   :  { %v336_v31 = vpop.trf.xlu2 }
 0x2bf   :  { %885 = vmatmul.msk.bf16.gmra.mxu3 %vm343_vm3, %v336_v31  ;;  %v527_v31 = vadd.f32 %v1181_v5, %v511_v28 }
 0x2ce   :  { %v337_v32 = vpop.trf.xlu2 }
 0x2cf   :  { %886 = vmatmul.msk.bf16.gmra.mxu3 %vm343_vm3, %v337_v32  ;;  %v492_v32 = vunpack.c.l.bf16 %v471_v29 }
 0x2de   :  { %v338_v33 = vpop.trf.xlu2 }
 0x2df   :  { %887 = vmatmul.msk.bf16.gmra.mxu3 %vm343_vm3, %v338_v33  ;;  %v493_v33 = vunpack.c.h.bf16 %v471_v29  ;;  %v515_v29 = vadd.f32 %v1181_v5, %v499_v27 }
 0x2ee   :  { %v339_v34 = vpop.trf.xlu2 }
 0x2ef   :  { %888 = vmatmul.msk.bf16.gmra.mxu3 %vm343_vm3, %v339_v34  ;;  %v952_v34 = vld [vmem:[#allocation9 + $0x50] sm:$0xff] }
 0x2f0   :  { %687 = vmatpush.bf16.msra.mxu2 %v952_v34  ;;  %591 = vmatpush.bf16.xpose.msra.mxu0 %v952_v34 }
 0x2fe   :  { %v340_v35 = vpop.trf.xlu2 }
 0x2ff   :  { %889 = vmatmul.msk.bf16.gmra.mxu3 %vm343_vm3, %v340_v35  ;;  %v536_v35 = vpack.c.bf16 %v527_v31, %v526_v30 }
 0x30e   :  { %v341_v36 = vpop.trf.xlu2 }
 0x30f   :  { %890 = vmatmul.msk.bf16.gmra.mxu3 %vm343_vm3, %v341_v36  ;;  %v508_v36 = vmul.f32 %v1175_v2, %v492_v32 }
 0x31e   :  { %v342_v37 = vpop.trf.xlu2 }
 0x31f   :  { %891 = vmatmul.msk.bf16.gmra.mxu3 %vm343_vm3, %v342_v37  ;;  %v509_v37 = vmul.f32 %v1175_v2, %v493_v33 }
 0x332   :  { %v377_v38 = vpop.f32.mrf.mxu3 }
 0x33a   :  { %v379_v39 = vpop.f32.mrf.mxu3 }
 0x33b   :  { %v417_v40 = vpack.c.bf16 %v379_v39, %v377_v38  ;;  %v469_v38 = vld [vmem:[#allocation9 + $0x60] sm:$0xff]   ;;  %v524_v39 = vadd.f32 %v1181_v5, %v508_v36 }
 0x342   :  { %v382_v41 = vpop.f32.mrf.mxu3 }
 0x34a   :  { %v384_v42 = vpop.f32.mrf.mxu3 }
 0x34b   :  { %v418_v43 = vpack.c.bf16 %v384_v42, %v382_v41  ;;  %v490_v41 = vunpack.c.l.bf16 %v469_v38  ;;  %v491_v42 = vunpack.c.h.bf16 %v469_v38 }
 0x352   :  { %v387_v44 = vpop.f32.mrf.mxu3 }
 0x35a   :  { %v389_v45 = vpop.f32.mrf.mxu3 }
 0x35b   :  { %v419_v46 = vpack.c.bf16 %v389_v45, %v387_v44  ;;  %v507_v45 = vmul.f32 %v1175_v2, %v491_v42 }
 0x362   :  { %v392_v47 = vpop.f32.mrf.mxu3 }
 0x36a   :  { %v394_v48 = vpop.f32.mrf.mxu3 }
 0x36b   :  { %v420_v49 = vpack.c.bf16 %v394_v48, %v392_v47  ;;  %v523_v48 = vadd.f32 %v1181_v5, %v507_v45 }
 0x372   :  { %v397_v51 = vpop.f32.mrf.mxu3 }
 0x37a   :  { %v399_v53 = vpop.f32.mrf.mxu3 }
 0x37b   :  { %v421_v8 = vpack.c.bf16 %v399_v53, %v397_v51  ;;  %v950_v53 = vld [vmem:[#allocation9 + $0x40] sm:$0xff] }
 0x382   :  { %v402_v55 = vpop.f32.mrf.mxu3 }
 0x38a   :  { %v404_v56 = vpop.f32.mrf.mxu3 }
 0x38b   :  { %v422_v7 = vpack.c.bf16 %v404_v56, %v402_v55 }
 0x392   :  { %v407_v57 = vpop.f32.mrf.mxu3 }
 0x39a   :  { %v409_v59 = vpop.f32.mrf.mxu3 }
 0x39b   :  { %v423_v4 = vpack.c.bf16 %v409_v59, %v407_v57  ;;  %v465_v59 = vld [vmem:[#allocation9 + $0x50] sm:$0xff]  }
 0x3a2   :  { %v412_v60 = vpop.f32.mrf.mxu3 }
 0x3aa   :  { %v414_v63 = vpop.f32.mrf.mxu3 }
 0x3ab   :  { %v424_v1 = vpack.c.bf16 %v414_v63, %v412_v60  ;;  %v486_v63 = vunpack.c.l.bf16 %v465_v59 }
 0x3ad   :  { %425 = vmatpush.bf16.msrb.mxu1 %v424_v1  ;;  %v487_v1 = vunpack.c.h.bf16 %v465_v59  ;;  %v502_v6 = vmul.f32 %v1175_v2, %v486_v63 }
 0x3af   :  { %v518_v9 = vadd.f32 %v1181_v5, %v502_v6 }
 0x3b1   :  { %426 = vmatpush.bf16.msrb.mxu1 %v423_v4 }
 0x3b5   :  { %427 = vmatpush.bf16.msrb.mxu1 %v422_v7  ;;  %v503_v7 = vmul.f32 %v1175_v2, %v487_v1 }
 0x3b7   :  { %v519_v10 = vadd.f32 %v1181_v5, %v503_v7  ;;  %v646_v7 = vstv %s892_s7 }
 0x3b8   :  { %vm647_vm5 = vcmp.lt.s32.totalorder %v1242_v52, %v646_v7  ;;  %vm648_vm6 = vcmp.lt.s32.totalorder %v1246_v54, %v646_v7 }
 0x3b9   :  { %428 = vmatpush.bf16.msrb.mxu1 %v421_v8  ;;  %v463_v8 = vld [vmem:[#allocation9 + $0x48] sm:$0xff]   ;;  %v532_v14 = vpack.c.bf16 %v519_v10, %v518_v9  ;;  %v1320_v10 = vld [vmem:[#allocation6 + $0x8] sm:$0xf] }
 0x3ba   :  { %v484_v11 = vunpack.c.l.bf16 %v463_v8  ;;  %v485_v12 = vunpack.c.h.bf16 %v463_v8  ;;  %808 = vst [vmem:[#allocation11 + $0x20] sm:$0xf] %v1320_v10 }
 0x3bc   :  { %v500_v16 = vmul.f32 %v1175_v2, %v484_v11  ;;  %v501_v17 = vmul.f32 %v1175_v2, %v485_v12 }
 0x3bd   :  { %429 = vmatpush.bf16.msrb.mxu1 %v420_v49 }
 0x3be   :  { %v517_v21 = vadd.f32 %v1181_v5, %v501_v17 }
 0x3c1   :  { %430 = vmatpush.bf16.msrb.mxu1 %v419_v46  ;;  %v467_v46 = vld [vmem:[#allocation9 + $0x58] sm:$0xff]  }
 0x3c2   :  { %v488_v49 = vunpack.c.l.bf16 %v467_v46  ;;  %v489_v51 = vunpack.c.h.bf16 %v467_v46 }
 0x3c4   :  { %v504_v56 = vmul.f32 %v1175_v2, %v488_v49  ;;  %v505_v57 = vmul.f32 %v1175_v2, %v489_v51 }
 0x3c5   :  { %431 = vmatpush.bf16.msrb.mxu1 %v418_v43  ;;  %v951_v43 = vld [vmem:[#allocation9 + $0x48] sm:$0xff] }
 0x3c6   :  { %688 = vmatpush.bf16.msra.mxu2 %v951_v43  ;;  %592 = vmatpush.bf16.xpose.msra.mxu0 %v951_v43  ;;  %v520_v60 = vadd.f32 %v1181_v5, %v504_v56  ;;  %v521_v62 = vadd.f32 %v1181_v5, %v505_v57 }
 0x3c8   :  { %v533_v4 = vpack.c.bf16 %v521_v62, %v520_v60 }
 0x3c9   :  { %432 = vmatpush.bf16.msrb.mxu1 %v417_v40  ;;  %v525_v40 = vadd.f32 %v1181_v5, %v509_v37 }
 0x3ca   :  { %689 = vmatpush.bf16.msra.mxu2 %v950_v53 }
 0x3cb   :  { %v535_v44 = vpack.c.bf16 %v525_v40, %v524_v39  ;;  %v620_v39 = vstv %s893_s30 }
 0x3cc   :  { %433 = vmatmul.bf16.vlgmr.msrb.gmra.mxu1 %v1240_v50  ;;  %v506_v50 = vmul.f32 %v1175_v2, %v490_v41  ;;  %vm621_vm4 = vcmp.lt.s32.totalorder %v1237_v19, %v620_v39 }
 0x3cd   :  { %606 = vmatpush.bf16.xpose.msra.mxu1 %v537_v26  ;;  %v498_v26 = vmul.f32 %v1175_v2, %v482_v22 }
 0x3ce   :  { %v522_v47 = vadd.f32 %v1181_v5, %v506_v50  ;;  %593 = vmatpush.bf16.xpose.msra.mxu0 %v950_v53  ;;  %743 = vmatpush.bf16.msrb.mxu2 %v949_v3 }
 0x3cf   :  { %v514_v28 = vadd.f32 %v1181_v5, %v498_v26 }
 0x3d0   :  { %v534_v55 = vpack.c.bf16 %v523_v48, %v522_v47 }
 0x3d1   :  { %v530_v30 = vpack.c.bf16 %v515_v29, %v514_v28 }
 0x3d5   :  { %607 = vmatpush.bf16.xpose.msra.mxu1 %v536_v35  ;;  %594 = vmatmul.bf16.vlgmr.msra.gmra.mxu0 %v1225_v15  ;;  %v516_v15 = vadd.f32 %v1181_v5, %v500_v16  ;;  %v931_v16 = vsel %vm648_vm6, 1.0, %v1109_v61 }
 0x3d7   :  { %v531_v24 = vpack.c.bf16 %v517_v21, %v516_v15 }
 0x3dd   :  { %608 = vmatpush.bf16.xpose.msra.mxu1 %v535_v44 }
 0x3e5   :  { %609 = vmatpush.bf16.xpose.msra.mxu1 %v534_v55 }
 0x3ed   :  { %610 = vmatpush.bf16.xpose.msra.mxu1 %v533_v4 }
 0x3f5   :  { %611 = vmatpush.bf16.xpose.msra.mxu1 %v532_v14  ;;  %v930_v14 = vsel %vm647_vm5, 1.0, %v1109_v61  ;;  %v480_v61 = vunpack.c.l.bf16 %v1320_v10 }
 0x3fd   :  { %612 = vmatpush.bf16.xpose.msra.mxu1 %v531_v24 }
 0x405   :  { %613 = vmatpush.bf16.xpose.msra.mxu1 %v530_v30 }
 0x40c   :  { %614 = vmatmul.bf16.vlgmr.msra.gmra.mxu1 %v949_v3 }
 0x449   :  { %v434_v31 = vpop.f32.mrf.mxu1 }
 0x44a   :  { %v451_v32 = vmul.f32 %v434_v31, %v104_v20  ;;  %v1325_v31 = vld [vmem:[#allocation6 + $0xc] sm:$0xf] }
 0x44b   :  { %809 = vst [vmem:[#allocation11 + $0x30] sm:$0xf] %v1325_v31 }
 0x44c   :  { %v453_v33 = vpack.c.bf16 %v451_v32, %v451_v32 }
 0x44e   :  { %455 = vst [vmem:[#allocation11 + $0xc] sm:$0xf] %v453_v33 }
 0x451   :  { %v436_v34 = vpop.f32.mrf.mxu1 }
 0x452   :  { %v452_v35 = vmul.f32 %v436_v34, %v105_v25  ;;  %v595_v2 = vpop.f32.mrf.mxu0 }
 0x453   :  { %v596_v5 = vadd.f32 %v595_v2, %v168_v0 }
 0x454   :  { %v454_v36 = vpack.c.bf16 %v452_v35, %v452_v35 }
 0x455   :  { %v599_v38 = vperm.slane %v596_v5, 0 }
 0x456   :  { %456 = vst [vmem:[#allocation11 + $0x1c] sm:$0xf] %v454_v36  ;;  %v481_v36 = vunpack.c.l.bf16 %v1325_v31 }
 0x45a   :  { %v597_v37 = vpop.f32.mrf.mxu0 }
 0x489   :  { %v615_v58 = vpop.f32.mrf.mxu1 }
 0x48a   :  { %v616_v20 = vadd.f32 %v615_v58, %v599_v38 }
 0x48c   :  { %v624_v40 = vsel %vm621_vm4, %v616_v20, -1e+30 }
 0x48d   :  { %626 = vmax.xlane.f32.xlu2 %v624_v40 }
 0x491   :  { %v617_v13 = vpop.f32.mrf.mxu1 }
 0x492   :  { %v618_v25 = vadd.f32 %v617_v13, %v599_v38 }
 0x494   :  { %v625_v41 = vsel %vm621_vm4, %v618_v25, -1e+30 }
 0x495   :  { %628 = vmax.xlane.f32.xlu0 %v625_v41 }
 0x500   :  { %v627_v42 = vpop.xlane.xlu2 %626 }
 0x501   :  { %v630_v43 = vsub.f32 %v624_v40, %v627_v42 }
 0x503   :  { %v632_v44 = vmul.f32 1.442695, %v630_v43 }
 0x505   :  { %985 = vpow2.f32 %v632_v44 }
 0x508   :  { %v629_v50 = vpop.xlane.xlu0 %628 }
 0x509   :  { %v631_v45 = vsub.f32 %v625_v41, %v629_v50 }
 0x50b   :  { %v986_v46 = vpop.eup %985  ;;  %v634_v0 = vmul.f32 1.442695, %v631_v45 }
 0x50c   :  { %636 = vadd.xlane.f32.xlu1 %v986_v46 }
 0x50d   :  { %987 = vpow2.f32 %v634_v0 }
 0x513   :  { %v988_v47 = vpop.eup %987 }
 0x514   :  { %638 = vadd.xlane.f32.xlu0 %v988_v47 }
 0x57f   :  { %v637_v19 = vpop.xlane.xlu1 %636 }
 0x580   :  { %989 = vrcp.f32 %v637_v19 }
 0x586   :  { %v990_v48 = vpop.eup %989 }
 0x587   :  { %v639_v49 = vpop.xlane.xlu0 %638  ;;  %v642_v51 = vmul.f32 %v990_v48, %v986_v46 }
 0x588   :  { %991 = vrcp.f32 %v639_v49 }
 0x589   :  { %v644_v53 = vpack.c.bf16 %v642_v51, %v642_v51 }
 0x58b   :  { %v653_v55 = vunpack.c.l.bf16 %v644_v53  ;;  %v678_v63 = vunpack.c.l.b16 %v644_v53 }
 0x58d   :  { %v655_v56 = vmul.f32 1.442695, %v653_v55 }
 0x58e   :  { %v992_v57 = vpop.eup %991 }
 0x58f   :  { %v643_v59 = vmul.f32 %v992_v57, %v988_v47  ;;  %993 = vpow2.f32 %v655_v56 }
 0x591   :  { %v645_v60 = vpack.c.bf16 %v643_v59, %v643_v59 }
 0x593   :  { %v654_v62 = vunpack.c.l.bf16 %v645_v60  ;;  %v679_v1 = vunpack.c.l.b16 %v645_v60 }
 0x595   :  { %v657_v3 = vmul.f32 1.442695, %v654_v62  ;;  %v1315_v4 = vpack.c.b16 %v679_v1, %v678_v63  ;;  %v994_v6 = vpop.eup %993 }
 0x596   :  { %v659_v8 = vpack.c.bf16 %v994_v6, %v994_v6 }
 0x597   :  { %995 = vpow2.f32 %v657_v3  ;;  %690 = vmatmul.bf16.vlgmr.msra.gmra.mxu2 %v1315_v4 }
 0x598   :  { %v661_v12 = vunpack.c.l.bf16 %v659_v8 }
 0x59a   :  { %v663_v18 = vmul.f32 %v930_v14, %v661_v12 }
 0x59d   :  { %v996_v9 = vpop.eup %995 }
 0x59e   :  { %v660_v11 = vpack.c.bf16 %v996_v9, %v996_v9 }
 0x5a0   :  { %v662_v17 = vunpack.c.l.bf16 %v660_v11 }
 0x5a2   :  { %v664_v15 = vmul.f32 %v931_v16, %v662_v17 }
 0x5a4   :  { %v665_v21 = vadd.f32 %v664_v15, %v663_v18 }
 0x5a6   :  { %v666_v22 = vrot.slane %v665_v21, 4 }
 0x5a8   :  { %v667_v23 = vadd.f32 %v666_v22, %v665_v21 }
 0x5aa   :  { %v668_v52 = vrot.slane %v667_v23, 2 }
 0x5ac   :  { %v669_v24 = vadd.f32 %v668_v52, %v667_v23 }
 0x5ae   :  { %v670_v54 = vrot.slane %v669_v24, 1 }
 0x5b0   :  { %v671_v26 = vadd.f32 %v670_v54, %v669_v24 }
 0x5b2   :  { %997 = vrcp.f32 %v671_v26 }
 0x5b8   :  { %v998_v27 = vpop.eup %997 }
 0x5b9   :  { %v673_v28 = vmul.f32 %v998_v27, %v663_v18  ;;  %v674_v29 = vmul.f32 %v998_v27, %v664_v15 }
 0x5bb   :  { %v675_v30 = vpack.c.bf16 %v674_v29, %v673_v28 }
 0x5bd   :  { %696 = vxpose.xlu1.c.b16.start.end [1/1] (short) %v675_v30, 128 }
 0x61a   :  { %v691_v32 = vpop.f32.mrf.mxu2 }
 0x61b   :  { %v810_v33 = vpack.c.bf16 %v691_v32, %v691_v32  ;;  %v814_v34 = vmul.f32 %v691_v32, %v480_v61 }
 0x61d   :  { %812 = vst [vmem:[#allocation11 + $0x24] sm:$0xf] %v810_v33  ;;  %v816_v35 = vpack.c.bf16 %v814_v34, %v814_v34 }
 0x61f   :  { %818 = vst [vmem:[#allocation11 + $0x28] sm:$0xf] %v816_v35 }
 0x622   :  { %v693_v2 = vpop.f32.mrf.mxu2 }
 0x623   :  { %v811_v37 = vpack.c.bf16 %v693_v2, %v693_v2  ;;  %v815_v5 = vmul.f32 %v693_v2, %v481_v36 }
 0x625   :  { %813 = vst [vmem:[#allocation11 + $0x34] sm:$0xf] %v811_v37  ;;  %v817_v38 = vpack.c.bf16 %v815_v5, %v815_v5 }
 0x627   :  { %819 = vst [vmem:[#allocation11 + $0x38] sm:$0xf] %v817_v38 }
 0x669   :  { %v704_v39 = vpop.trf.xlu1 }
 0x66a   :  { %932 = vmatmul.msk.bf16.vlgmr.msrb.gmra.mxu2 %vm343_vm3, %v704_v39 }
 0x679   :  { %v705_v58 = vpop.trf.xlu1 }
 0x67a   :  { %933 = vmatmul.msk.bf16.gmra.mxu2 %vm343_vm3, %v705_v58 }
 0x689   :  { %v706_v20 = vpop.trf.xlu1 }
 0x68a   :  { %934 = vmatmul.msk.bf16.gmra.mxu2 %vm343_vm3, %v706_v20 }
 0x699   :  { %v707_v40 = vpop.trf.xlu1 }
 0x69a   :  { %935 = vmatmul.msk.bf16.gmra.mxu2 %vm343_vm3, %v707_v40 }
 0x6a9   :  { %v708_v13 = vpop.trf.xlu1 }
 0x6aa   :  { %936 = vmatmul.msk.bf16.gmra.mxu2 %vm343_vm3, %v708_v13 }
 0x6b9   :  { %v709_v25 = vpop.trf.xlu1 }
 0x6ba   :  { %937 = vmatmul.msk.bf16.gmra.mxu2 %vm343_vm3, %v709_v25 }
 0x6c9   :  { %v710_v41 = vpop.trf.xlu1 }
 0x6ca   :  { %938 = vmatmul.msk.bf16.gmra.mxu2 %vm343_vm3, %v710_v41 }
 0x6d9   :  { %v711_v42 = vpop.trf.xlu1 }
 0x6da   :  { %939 = vmatmul.msk.bf16.gmra.mxu2 %vm343_vm3, %v711_v42 }
 0x6ed   :  { %v745_v43 = vpop.f32.mrf.mxu2 }
 0x6f5   :  { %v747_v44 = vpop.f32.mrf.mxu2 }
 0x6f6   :  { %v785_v50 = vpack.c.bf16 %v747_v44, %v745_v43 }
 0x6fd   :  { %v750_v45 = vpop.f32.mrf.mxu2 }
 0x705   :  { %v752_v46 = vpop.f32.mrf.mxu2 }
 0x706   :  { %v786_v0 = vpack.c.bf16 %v752_v46, %v750_v45 }
 0x70d   :  { %v755_v47 = vpop.f32.mrf.mxu2 }
 0x715   :  { %v757_v19 = vpop.f32.mrf.mxu2 }
 0x716   :  { %v787_v48 = vpack.c.bf16 %v757_v19, %v755_v47 }
 0x71d   :  { %v760_v49 = vpop.f32.mrf.mxu2 }
 0x725   :  { %v762_v51 = vpop.f32.mrf.mxu2 }
 0x726   :  { %v788_v53 = vpack.c.bf16 %v762_v51, %v760_v49 }
 0x72d   :  { %v765_v55 = vpop.f32.mrf.mxu2 }
 0x735   :  { %v767_v56 = vpop.f32.mrf.mxu2 }
 0x736   :  { %v789_v8 = vpack.c.bf16 %v767_v56, %v765_v55 }
 0x73d   :  { %v770_v57 = vpop.f32.mrf.mxu2 }
 0x745   :  { %v772_v59 = vpop.f32.mrf.mxu2 }
 0x746   :  { %v790_v7 = vpack.c.bf16 %v772_v59, %v770_v57 }
 0x74d   :  { %v775_v60 = vpop.f32.mrf.mxu2 }
 0x755   :  { %v777_v62 = vpop.f32.mrf.mxu2 }
 0x756   :  { %v791_v6 = vpack.c.bf16 %v777_v62, %v775_v60 }
 0x75d   :  { %v780_v63 = vpop.f32.mrf.mxu2 }
 0x765   :  { %v782_v1 = vpop.f32.mrf.mxu2 }
 0x766   :  { %v792_v3 = vpack.c.bf16 %v782_v1, %v780_v63 }
 0x768   :  { %793 = vmatpush.bf16.msrb.mxu3 %v792_v3 }
 0x76c   :  { %794 = vmatpush.bf16.msrb.mxu3 %v791_v6 }
 0x770   :  { %795 = vmatpush.bf16.msrb.mxu3 %v790_v7 }
 0x774   :  { %796 = vmatpush.bf16.msrb.mxu3 %v789_v8 }
 0x778   :  { %797 = vmatpush.bf16.msrb.mxu3 %v788_v53 }
 0x77c   :  { %798 = vmatpush.bf16.msrb.mxu3 %v787_v48 }
 0x780   :  { %799 = vmatpush.bf16.msrb.mxu3 %v786_v0 }
 0x784   :  { %800 = vmatpush.bf16.msrb.mxu3 %v785_v50 }
 0x787   :  { %801 = vmatmul.bf16.vlgmr.msrb.gmra.mxu3 %v1315_v4 }
 0x80a   :  { %v802_v9 = vpop.f32.mrf.mxu3 }
 0x80b   :  { %v820_v11 = vmul.f32 %v802_v9, %v480_v61 }
 0x80d   :  { %v822_v12 = vpack.c.bf16 %v820_v11, %v820_v11 }
 0x80f   :  { %824 = vst [vmem:[#allocation11 + $0x2c] sm:$0xf] %v822_v12 }
 0x812   :  { %v804_v14 = vpop.f32.mrf.mxu3 }
 0x813   :  { %v821_v16 = vmul.f32 %v804_v14, %v481_v36 }
 0x815   :  { %v823_v17 = vpack.c.bf16 %v821_v16, %v821_v16 }
 0x817   :  { %825 = vst [vmem:[#allocation11 + $0x3c] sm:$0xf] %v823_v17 }
 0x818   :  { %838 = dma.vmem_to_hbm [thread:$0]  %s831_s12, 1024, %s833_s0, [#allocation8], %s1111_s15, %s1111_s15, %s1112_s16  }
 0x819   :  { %1101 = dma.done.wait [#allocation8], 1024  }
 0x81a   :  { %1102 = vsyncadd [#allocation8], 4294966272 }
 0x81b   :  { %843 = vsyncpa [#allocation7], 1 }
 0x81c   :  { %844 = vsyncpa [#allocation10], 1 }
 0x81d   :  { %845 = vsyncpa [#allocation8], 1 }

</bundles_post_ra>
